<compile_context>
chip_gen: v6e
topology: v6e:2x2x1
jax: 0.10.0
libtpu: 0.0.40
codegen_flags: <defaults>
</compile_context>

<pallas_src>
import functools

import numpy as np
import jax
import jax.numpy as jnp
from jax import lax
from jax.experimental import pallas as pl
from jax.experimental.pallas import tpu as pltpu


def _spatial_attention_kernel(wb_ref, masks_ref, x_ref, o_ref, *, width, c_chunk):
    # wb_ref:    (19,)  f32 SMEM  -> [w_avg(9 taps), w_max(9 taps), bias]
    # masks_ref: (8,HWP) f32 VMEM -> boundary masks for the 8 non-center taps
    # x_ref:     (nb, C, HWP) VMEM input block (lane-dense padded last dim)
    # o_ref:     (nb, C, HWP) VMEM output block
    nb, C, HWP = x_ref.shape
    n_full = C // c_chunk
    rem = C - n_full * c_chunk

    # ---- Pass 1: fused channel sum + max, streamed over C (f32 accumulation).
    def chunk_stats(xc, s, m):
        s = s + jnp.sum(xc, axis=1, dtype=jnp.float32)
        m = jnp.maximum(m, jnp.max(xc, axis=1).astype(jnp.float32))
        return s, m

    s0 = jnp.zeros((nb, HWP), jnp.float32)
    m0 = jnp.full((nb, HWP), -jnp.inf, jnp.float32)
    if n_full == 1 and rem == 0:
        s, m = chunk_stats(x_ref[...], s0, m0)
    else:
        def body(ci, carry):
            start = pl.multiple_of(ci * c_chunk, c_chunk)
            return chunk_stats(x_ref[:, pl.ds(start, c_chunk), :], *carry)
        s, m = lax.fori_loop(0, n_full, body, (s0, m0), unroll=2)
        if rem:
            s, m = chunk_stats(x_ref[:, pl.ds(n_full * c_chunk, rem), :], s, m)

    avg = s * (1.0 / C)

    # ---- 3x3 "same" conv on the pooled maps: lane rolls + boundary masks.
    w = [wb_ref[i] for i in range(19)]        # hoisted scalar SMEM reads
    bias = w[18]
    masks = masks_ref[...]                    # one (8, HWP) load, sliced below

    acc = jnp.zeros((nb, HWP), jnp.float32)
    t = 0   # tap index into the flattened OIHW weights
    mi = 0  # index into the 8 non-center boundary masks
    for dh in (-1, 0, 1):
        for dw in (-1, 0, 1):
            tap = w[t] * avg + w[9 + t] * m   # (nb, HWP) f32
            if dh == 0 and dw == 0:
                acc = acc + tap               # center tap: no shift, no mask
            else:
                d = dh * width + dw           # flat source offset
                # rolled[i] = tap[(i + d) % HWP]; wrap-around killed by mask.
                rolled = pltpu.roll(tap, shift=(-d) % HWP, axis=1)
                acc = acc + masks[mi:mi + 1, :] * rolled
                mi += 1
            t += 1
    att = jax.nn.sigmoid(acc + bias)          # (nb, HWP) f32

    # ---- Pass 2: broadcast multiply + store in the input dtype, streamed
    #      over C (implicit broadcast; no materialized f32 attention slab).
    att_x = att.astype(o_ref.dtype)
    if n_full == 1 and rem == 0:
        o_ref[...] = x_ref[...] * att_x[:, None, :]
    else:
        def body2(ci, carry):
            start = pl.multiple_of(ci * c_chunk, c_chunk)
            sl = pl.ds(start, c_chunk)
            o_ref[:, sl, :] = x_ref[:, sl, :] * att_x[:, None, :]
            return carry
        lax.fori_loop(0, n_full, body2, 0, unroll=2)
        if rem:
            sl = pl.ds(n_full * c_chunk, rem)
            o_ref[:, sl, :] = x_ref[:, sl, :] * att_x[:, None, :]


def _vmem_capacity_bytes():
    """Best-effort physical VMEM query; conservative fallbacks."""
    try:
        return int(pltpu.get_tpu_info().vmem_capacity_bytes)
    except Exception:
        pass
    try:
        kind = jax.devices()[0].device_kind.lower()
        if "v7" in kind:
            return 64 * 1024 * 1024
    except Exception:
        pass
    return 128 * 1024 * 1024


def spatial_attention(x, conv_w, conv_b):
    """x: (N, C, H, W); conv_w: (1, 2, 3, 3); conv_b: (1,)."""
    N, C, H, W = x.shape
    HW = H * W
    HWP = ((HW + 127) // 128) * 128           # lane-dense padded last dim

    # Free metadata reshape of contiguous NCHW; zero-pad flat axis to HWP.
    x_flat = x.reshape(N, C, HW)
    if HWP != HW:
        x_flat = jnp.pad(x_flat, ((0, 0), (0, 0), (0, HWP - HW)))

    # Conv weights + bias flattened to one (19,) f32 SMEM array.
    wb = jnp.concatenate(
        [conv_w.reshape(-1), conv_b.reshape(-1)]).astype(jnp.float32)

    # 8 per-tap boundary masks (center tap excluded) over the padded flat axis.
    idx = np.arange(HWP, dtype=np.int64)
    row, col = idx // W, idx % W
    valid = idx < HW
    mask_rows = []
    for dh in (-1, 0, 1):
        for dw in (-1, 0, 1):
            if dh == 0 and dw == 0:
                continue
            ok = (valid & (row + dh >= 0) & (row + dh <= H - 1)
                  & (col + dw >= 0) & (col + dw <= W - 1))
            mask_rows.append(ok.astype(np.float32))
    masks = jnp.asarray(np.stack(mask_rows))  # (8, HWP) f32

    # ---- Generation-aware block sizing + VMEM budget.
    itemsize = jnp.dtype(x.dtype).itemsize
    vmem_phys = _vmem_capacity_bytes()
    if vmem_phys >= 96 * 1024 * 1024:         # v5e / v6e (128 MiB VMEM)
        target_block = 14 * 1024 * 1024
        vmem_cap = 100 * 1024 * 1024
    else:                                     # v7x-class (64 MiB VMEM)
        target_block = 7 * 1024 * 1024
        vmem_cap = 48 * 1024 * 1024

    c_chunk = C if C <= 32 else 32            # multiple of sublane pack
    per_batch = C * HWP * itemsize

    def vmem_need(nb_):
        block = nb_ * per_batch
        pooled = 8 * nb_ * HWP * 4                                 # f32 temps
        chunk = 2 * nb_ * min(c_chunk, C) * HWP * max(itemsize, 4)  # chunk live
        return 4 * block + 2 * masks.size * 4 + pooled + chunk + (8 << 20)

    nb_cap = max(1, N // 2)                   # >= 2 grid steps when N >= 2
    nb = 1
    for cand in range(min(nb_cap, N), 0, -1):
        if N % cand:
            continue
        if cand * per_batch <= target_block and vmem_need(cand) <= vmem_cap:
            nb = cand
            break
    # TODO(synk): two-call fallback (pool+conv pass, then C/HW-blocked multiply
    # pass) for feature maps whose single-batch slab exceeds the 64-MiB-VMEM
    # budget on v7x-class parts.

    vmem_limit = int(min(vmem_cap, max(32 * 1024 * 1024, vmem_need(nb))))
    grid = (N // nb,)

    kernel = functools.partial(_spatial_attention_kernel,
                               width=W, c_chunk=c_chunk)

    out_flat = pl.pallas_call(
        kernel,
        out_shape=jax.ShapeDtypeStruct((N, C, HWP), x.dtype),
        grid=grid,
        in_specs=[
            pl.BlockSpec(memory_space=pltpu.MemorySpace.SMEM),   # wb (19,)
            pl.BlockSpec((8, HWP), lambda n: (0, 0)),            # tap masks
            pl.BlockSpec((nb, C, HWP), lambda n: (n, 0, 0)),     # x block
        ],
        out_specs=pl.BlockSpec((nb, C, HWP), lambda n: (n, 0, 0)),
        compiler_params=pltpu.CompilerParams(
            dimension_semantics=("parallel",),
            vmem_limit_bytes=vmem_limit,
        ),
    )(wb, masks, x_flat)

    if HWP != HW:
        out_flat = out_flat[:, :, :HW]
    return out_flat.reshape(N, C, H, W)


def _reference(x, conv_w, conv_b):
    """Pure-JAX reference matching the PyTorch forward exactly."""
    avg_pool = jnp.mean(x, axis=1, keepdims=True)
    max_pool = jnp.max(x, axis=1, keepdims=True)
    pool = jnp.concatenate([avg_pool, max_pool], axis=1)       # (N, 2, H, W)
    att = lax.conv_general_dilated(
        pool, conv_w, window_strides=(1, 1), padding=((1, 1), (1, 1)),
        dimension_numbers=("NCHW", "OIHW", "NCHW"))
    att = att + conv_b.reshape(1, 1, 1, 1)
    att = jax.nn.sigmoid(att)
    return x * att


if __name__ == "__main__":
    key = jax.random.PRNGKey(0)
    kx, kw, kb = jax.random.split(key, 3)

    N, C, H, W = 2, 4, 16, 16
    x = jax.random.normal(kx, (N, C, H, W), dtype=jnp.float32)

    # Deterministic synthetic Conv2d(2, 1, 3, padding=1) parameters.
    fan_in = 2 * 3 * 3
    bound = 1.0 / (fan_in ** 0.5)
    conv_w = jax.random.uniform(kw, (1, 2, 3, 3), jnp.float32, -bound, bound)
    conv_b = jax.random.uniform(kb, (1,), jnp.float32, -bound, bound)

    out = spatial_attention(x, conv_w, conv_b)
    out = jax.block_until_ready(out)

    ref = _reference(x, conv_w, conv_b)
    assert out.shape == (N, C, H, W)
    assert jnp.allclose(out, ref, atol=1e-5, rtol=1e-5), "mismatch vs reference"

    print("KERNEL_OK")
</pallas_src>

<mosaic_0001>
module attributes {stable_mosaic.version = 11 : i64} {
  func.func @_spatial_attention_kernel(%arg0: i32, %arg1: memref<19xf32, #tpu.memory_space<smem>>, %arg2: memref<8x256xf32, #tpu.memory_space<vmem>>, %arg3: memref<1x4x256xf32, #tpu.memory_space<vmem>>, %arg4: memref<1x4x256xf32, #tpu.memory_space<vmem>>) attributes {dimension_semantics = [#tpu.dimension_semantics<parallel>], iteration_bounds = array<i64: 2>, scalar_prefetch = 0 : i64, scratch_operands = 0 : i64, tpu.core_type = #tpu.core_type<tc>, window_params = [{transform_indices = @transform_0, window_bounds = array<i64: 19>}, {pipeline_mode = #tpu.pipeline_mode<synchronous>, transform_indices = @transform_1, window_bounds = array<i64: 8, 256>}, {transform_indices = @transform_2, window_bounds = array<i64: 1, 4, 256>}, {transform_indices = @transform_3, window_bounds = array<i64: 1, 4, 256>}]} {
    %cst = arith.constant 0.000000e+00 : f32
    %0 = vector.broadcast %cst : f32 to vector<1x256xf32>
    %cst_0 = arith.constant 0xFF800000 : f32
    %1 = vector.broadcast %cst_0 : f32 to vector<1x256xf32>
    %c0 = arith.constant 0 : index
    %c0_1 = arith.constant 0 : index
    %c0_2 = arith.constant 0 : index
    %2 = vector.load %arg3[%c0, %c0_1, %c0_2] : memref<1x4x256xf32, #tpu.memory_space<vmem>>, vector<1x4x256xf32>
    %cst_3 = arith.constant dense<0.000000e+00> : vector<1x256xf32>
    %3 = vector.multi_reduction <add>, %2, %cst_3 [1] : vector<1x4x256xf32> to vector<1x256xf32>
    %4 = arith.addf %0, %3 : vector<1x256xf32>
    %cst_4 = arith.constant dense<0xFF800000> : vector<1x256xf32>
    %5 = vector.multi_reduction <maximumf>, %2, %cst_4 [1] : vector<1x4x256xf32> to vector<1x256xf32>
    %6 = arith.maximumf %1, %5 : vector<1x256xf32>
    %cst_5 = arith.constant 2.500000e-01 : f32
    %7 = vector.broadcast %cst_5 : f32 to vector<1x256xf32>
    %8 = arith.mulf %4, %7 : vector<1x256xf32>
    %c0_6 = arith.constant 0 : index
    %9 = memref.load %arg1[%c0_6] : memref<19xf32, #tpu.memory_space<smem>>
    %c1 = arith.constant 1 : index
    %10 = memref.load %arg1[%c1] : memref<19xf32, #tpu.memory_space<smem>>
    %c2 = arith.constant 2 : index
    %11 = memref.load %arg1[%c2] : memref<19xf32, #tpu.memory_space<smem>>
    %c3 = arith.constant 3 : index
    %12 = memref.load %arg1[%c3] : memref<19xf32, #tpu.memory_space<smem>>
    %c4 = arith.constant 4 : index
    %13 = memref.load %arg1[%c4] : memref<19xf32, #tpu.memory_space<smem>>
    %c5 = arith.constant 5 : index
    %14 = memref.load %arg1[%c5] : memref<19xf32, #tpu.memory_space<smem>>
    %c6 = arith.constant 6 : index
    %15 = memref.load %arg1[%c6] : memref<19xf32, #tpu.memory_space<smem>>
    %c7 = arith.constant 7 : index
    %16 = memref.load %arg1[%c7] : memref<19xf32, #tpu.memory_space<smem>>
    %c8 = arith.constant 8 : index
    %17 = memref.load %arg1[%c8] : memref<19xf32, #tpu.memory_space<smem>>
    %c9 = arith.constant 9 : index
    %18 = memref.load %arg1[%c9] : memref<19xf32, #tpu.memory_space<smem>>
    %c10 = arith.constant 10 : index
    %19 = memref.load %arg1[%c10] : memref<19xf32, #tpu.memory_space<smem>>
    %c11 = arith.constant 11 : index
    %20 = memref.load %arg1[%c11] : memref<19xf32, #tpu.memory_space<smem>>
    %c12 = arith.constant 12 : index
    %21 = memref.load %arg1[%c12] : memref<19xf32, #tpu.memory_space<smem>>
    %c13 = arith.constant 13 : index
    %22 = memref.load %arg1[%c13] : memref<19xf32, #tpu.memory_space<smem>>
    %c14 = arith.constant 14 : index
    %23 = memref.load %arg1[%c14] : memref<19xf32, #tpu.memory_space<smem>>
    %c15 = arith.constant 15 : index
    %24 = memref.load %arg1[%c15] : memref<19xf32, #tpu.memory_space<smem>>
    %c16 = arith.constant 16 : index
    %25 = memref.load %arg1[%c16] : memref<19xf32, #tpu.memory_space<smem>>
    %c17 = arith.constant 17 : index
    %26 = memref.load %arg1[%c17] : memref<19xf32, #tpu.memory_space<smem>>
    %c18 = arith.constant 18 : index
    %27 = memref.load %arg1[%c18] : memref<19xf32, #tpu.memory_space<smem>>
    %c0_7 = arith.constant 0 : index
    %c0_8 = arith.constant 0 : index
    %28 = vector.load %arg2[%c0_7, %c0_8] : memref<8x256xf32, #tpu.memory_space<vmem>>, vector<8x256xf32>
    %cst_9 = arith.constant 0.000000e+00 : f32
    %29 = vector.broadcast %cst_9 : f32 to vector<1x256xf32>
    %30 = vector.broadcast %9 : f32 to vector<1x256xf32>
    %31 = arith.mulf %30, %8 : vector<1x256xf32>
    %32 = vector.broadcast %18 : f32 to vector<1x256xf32>
    %33 = arith.mulf %32, %6 : vector<1x256xf32>
    %34 = arith.addf %31, %33 : vector<1x256xf32>
    %c17_i32 = arith.constant 17 : i32
    %35 = tpu.dynamic_rotate %34 by %c17_i32 dim 1 : vector<1x256xf32>, i32 -> vector<1x256xf32>
    %36 = vector.extract_strided_slice %28 {offsets = [0, 0], sizes = [1, 256], strides = [1, 1]} : vector<8x256xf32> to vector<1x256xf32>
    %37 = arith.mulf %36, %35 : vector<1x256xf32>
    %38 = arith.addf %29, %37 : vector<1x256xf32>
    %39 = vector.broadcast %10 : f32 to vector<1x256xf32>
    %40 = arith.mulf %39, %8 : vector<1x256xf32>
    %41 = vector.broadcast %19 : f32 to vector<1x256xf32>
    %42 = arith.mulf %41, %6 : vector<1x256xf32>
    %43 = arith.addf %40, %42 : vector<1x256xf32>
    %c16_i32 = arith.constant 16 : i32
    %44 = tpu.dynamic_rotate %43 by %c16_i32 dim 1 : vector<1x256xf32>, i32 -> vector<1x256xf32>
    %45 = vector.extract_strided_slice %28 {offsets = [1, 0], sizes = [1, 256], strides = [1, 1]} : vector<8x256xf32> to vector<1x256xf32>
    %46 = arith.mulf %45, %44 : vector<1x256xf32>
    %47 = arith.addf %38, %46 : vector<1x256xf32>
    %48 = vector.broadcast %11 : f32 to vector<1x256xf32>
    %49 = arith.mulf %48, %8 : vector<1x256xf32>
    %50 = vector.broadcast %20 : f32 to vector<1x256xf32>
    %51 = arith.mulf %50, %6 : vector<1x256xf32>
    %52 = arith.addf %49, %51 : vector<1x256xf32>
    %c15_i32 = arith.constant 15 : i32
    %53 = tpu.dynamic_rotate %52 by %c15_i32 dim 1 : vector<1x256xf32>, i32 -> vector<1x256xf32>
    %54 = vector.extract_strided_slice %28 {offsets = [2, 0], sizes = [1, 256], strides = [1, 1]} : vector<8x256xf32> to vector<1x256xf32>
    %55 = arith.mulf %54, %53 : vector<1x256xf32>
    %56 = arith.addf %47, %55 : vector<1x256xf32>
    %57 = vector.broadcast %12 : f32 to vector<1x256xf32>
    %58 = arith.mulf %57, %8 : vector<1x256xf32>
    %59 = vector.broadcast %21 : f32 to vector<1x256xf32>
    %60 = arith.mulf %59, %6 : vector<1x256xf32>
    %61 = arith.addf %58, %60 : vector<1x256xf32>
    %c1_i32 = arith.constant 1 : i32
    %62 = tpu.dynamic_rotate %61 by %c1_i32 dim 1 : vector<1x256xf32>, i32 -> vector<1x256xf32>
    %63 = vector.extract_strided_slice %28 {offsets = [3, 0], sizes = [1, 256], strides = [1, 1]} : vector<8x256xf32> to vector<1x256xf32>
    %64 = arith.mulf %63, %62 : vector<1x256xf32>
    %65 = arith.addf %56, %64 : vector<1x256xf32>
    %66 = vector.broadcast %13 : f32 to vector<1x256xf32>
    %67 = arith.mulf %66, %8 : vector<1x256xf32>
    %68 = vector.broadcast %22 : f32 to vector<1x256xf32>
    %69 = arith.mulf %68, %6 : vector<1x256xf32>
    %70 = arith.addf %67, %69 : vector<1x256xf32>
    %71 = arith.addf %65, %70 : vector<1x256xf32>
    %72 = vector.broadcast %14 : f32 to vector<1x256xf32>
    %73 = arith.mulf %72, %8 : vector<1x256xf32>
    %74 = vector.broadcast %23 : f32 to vector<1x256xf32>
    %75 = arith.mulf %74, %6 : vector<1x256xf32>
    %76 = arith.addf %73, %75 : vector<1x256xf32>
    %c255_i32 = arith.constant 255 : i32
    %77 = tpu.dynamic_rotate %76 by %c255_i32 dim 1 : vector<1x256xf32>, i32 -> vector<1x256xf32>
    %78 = vector.extract_strided_slice %28 {offsets = [4, 0], sizes = [1, 256], strides = [1, 1]} : vector<8x256xf32> to vector<1x256xf32>
    %79 = arith.mulf %78, %77 : vector<1x256xf32>
    %80 = arith.addf %71, %79 : vector<1x256xf32>
    %81 = vector.broadcast %15 : f32 to vector<1x256xf32>
    %82 = arith.mulf %81, %8 : vector<1x256xf32>
    %83 = vector.broadcast %24 : f32 to vector<1x256xf32>
    %84 = arith.mulf %83, %6 : vector<1x256xf32>
    %85 = arith.addf %82, %84 : vector<1x256xf32>
    %c241_i32 = arith.constant 241 : i32
    %86 = tpu.dynamic_rotate %85 by %c241_i32 dim 1 : vector<1x256xf32>, i32 -> vector<1x256xf32>
    %87 = vector.extract_strided_slice %28 {offsets = [5, 0], sizes = [1, 256], strides = [1, 1]} : vector<8x256xf32> to vector<1x256xf32>
    %88 = arith.mulf %87, %86 : vector<1x256xf32>
    %89 = arith.addf %80, %88 : vector<1x256xf32>
    %90 = vector.broadcast %16 : f32 to vector<1x256xf32>
    %91 = arith.mulf %90, %8 : vector<1x256xf32>
    %92 = vector.broadcast %25 : f32 to vector<1x256xf32>
    %93 = arith.mulf %92, %6 : vector<1x256xf32>
    %94 = arith.addf %91, %93 : vector<1x256xf32>
    %c240_i32 = arith.constant 240 : i32
    %95 = tpu.dynamic_rotate %94 by %c240_i32 dim 1 : vector<1x256xf32>, i32 -> vector<1x256xf32>
    %96 = vector.extract_strided_slice %28 {offsets = [6, 0], sizes = [1, 256], strides = [1, 1]} : vector<8x256xf32> to vector<1x256xf32>
    %97 = arith.mulf %96, %95 : vector<1x256xf32>
    %98 = arith.addf %89, %97 : vector<1x256xf32>
    %99 = vector.broadcast %17 : f32 to vector<1x256xf32>
    %100 = arith.mulf %99, %8 : vector<1x256xf32>
    %101 = vector.broadcast %26 : f32 to vector<1x256xf32>
    %102 = arith.mulf %101, %6 : vector<1x256xf32>
    %103 = arith.addf %100, %102 : vector<1x256xf32>
    %c239_i32 = arith.constant 239 : i32
    %104 = tpu.dynamic_rotate %103 by %c239_i32 dim 1 : vector<1x256xf32>, i32 -> vector<1x256xf32>
    %105 = vector.extract_strided_slice %28 {offsets = [7, 0], sizes = [1, 256], strides = [1, 1]} : vector<8x256xf32> to vector<1x256xf32>
    %106 = arith.mulf %105, %104 : vector<1x256xf32>
    %107 = arith.addf %98, %106 : vector<1x256xf32>
    %108 = vector.broadcast %27 : f32 to vector<1x256xf32>
    %109 = arith.addf %107, %108 : vector<1x256xf32>
    %110 = arith.negf %109 : vector<1x256xf32>
    %111 = math.exp %110 : vector<1x256xf32>
    %cst_10 = arith.constant 1.000000e+00 : f32
    %112 = vector.broadcast %cst_10 : f32 to vector<1x256xf32>
    %113 = arith.addf %112, %111 : vector<1x256xf32>
    %114 = arith.divf %112, %113 : vector<1x256xf32>
    %c0_11 = arith.constant 0 : index
    %c0_12 = arith.constant 0 : index
    %c0_13 = arith.constant 0 : index
    %115 = vector.load %arg3[%c0_11, %c0_12, %c0_13] : memref<1x4x256xf32, #tpu.memory_space<vmem>>, vector<1x4x256xf32>
    %116 = vector.shape_cast %114 : vector<1x256xf32> to vector<1x1x256xf32>
    %117 = vector.broadcast %116 : vector<1x1x256xf32> to vector<1x4x256xf32>
    %118 = arith.mulf %115, %117 : vector<1x4x256xf32>
    %c0_14 = arith.constant 0 : index
    %c0_15 = arith.constant 0 : index
    %c0_16 = arith.constant 0 : index
    %119 = vector.load %arg4[%c0_14, %c0_15, %c0_16] : memref<1x4x256xf32, #tpu.memory_space<vmem>>, vector<1x4x256xf32>
    tpu.vector_store %arg4[%c0_14, %c0_15, %c0_16], %118 {strides = array<i32>} : memref<1x4x256xf32, #tpu.memory_space<vmem>>, vector<1x4x256xf32>,
    return
  }
  func.func @transform_0(%arg0: i32) -> i32 {
    %c0_i32 = arith.constant 0 : i32
    %c0_i32_0 = arith.constant 0 : i32
    return %c0_i32 : i32
  }
  func.func @transform_1(%arg0: i32) -> (i32, i32) {
    %c0_i32 = arith.constant 0 : i32
    %c0_i32_0 = arith.constant 0 : i32
    %c0_i32_1 = arith.constant 0 : i32
    return %c0_i32, %c0_i32_0 : i32, i32
  }
  func.func @transform_2(%arg0: i32) -> (i32, i32, i32) {
    %c0_i32 = arith.constant 0 : i32
    %c0_i32_0 = arith.constant 0 : i32
    %c0_i32_1 = arith.constant 0 : i32
    return %arg0, %c0_i32, %c0_i32_0 : i32, i32, i32
  }
  func.func @transform_3(%arg0: i32) -> (i32, i32, i32) {
    %c0_i32 = arith.constant 0 : i32
    %c0_i32_0 = arith.constant 0 : i32
    %c0_i32_1 = arith.constant 0 : i32
    return %arg0, %c0_i32, %c0_i32_0 : i32, i32, i32
  }
}

</mosaic_0001>

<bundles_post_ra>
// kernel: tpu_custom_call.1
= control target key start
LH: loop header
LB: loop body
LE: loop exit
PB: predicated region body
PF: predicated region fallthrough
CT: control target
= control target key end

     0   :  { %8 = vsyncpa [#allocation5], 0  ;;  %s1285_s0 = inlined_call_operand.hbm [shape: f32[19], index: 0, kind: input, shape index: {}]   ;;  %s1286_s1 = inlined_call_operand.hbm [shape: f32[8,256], index: 1, kind: input, shape index: {}]   ;;  %s1287_s2 = inlined_call_operand.hbm [shape: f32[2,4,256], index: 2, kind: input, shape index: {}]   ;;  %s1288_s3 = inlined_call_operand.hbm [shape: f32[2,4,256], index: 3, kind: output, shape index: {}]  }
   0x1   :  { %9 = vsyncpa [#allocation3], 0 }
   0x2   :  { %10 = vsyncpa [#allocation8], 0 }
   0x3   :  { %12 = vsyncpa [#allocation8 + $0x1], 0 }
   0x4   :  { %13 = vsyncpa [#allocation4], 0 }
   0x5   :  { %15 = vsyncpa [#allocation4 + $0x1], 0  ;;  %s951_s12 = smov 0   ;;  %s953_s13 = smov 0  }
   0x6   :  { %s955_s14 = smov 0   ;;  %s957_s15 = smov 0  }
   0x7 LB: > { %s972_s16 = sadd.s32 4294967295, %s917_s15   ;;  %s656_s17 = sadd.s32 4294967294, %s917_s15   ;;  %s917_s15 = sphi %s957_s15, %s1312_s15   ;;  %s913_s14 = sphi %s955_s14, %s1311_s14   ;;  %s909_s13 = sphi %s953_s13, %s1310_s13   ;;  %s905_s12 = sphi %s951_s12, %s1309_s12  }
   0x8   : > { %p83_p0 = scmp.ne.s32.totalorder %s909_s13, %s905_s12  ;;  %p1289_p1 = scmp.eq.s32.totalorder %s972_s16, 0 }
   0x9   : > { %p107_p2 = scmp.eq.s32.totalorder %s972_s16, 1  ;;  %p113_p3 = scmp.eq.s32.totalorder %s656_s17, 1 }
   0xa   : > { %p981_p4 = por %p1289_p1, %p83_p0  ;;  %p657_p5 = scmp.ge.s32.totalorder %s917_s15, 1 }
   0xb   : > { %p986_p6 = por %p113_p3, %p83_p0  ;;  %p120_p7 = scmp.lt.s32.totalorder %s917_s15, 3 }
   0xc   : > { %s1293_s18 = scalar_select %p981_p4, 1, 0 }
   0xd   : > { %s1294_s19 = scalar_select %p986_p6, 1, 0 }
   0xe   : > { %p991_p8 = pnand %p657_p5, %p120_p7  ;;  %s919_s21 = smov [#allocation6]  }
   0xf   : > { %s142_s22 = sshll.u32 %s919_s21, 4  ;;  %s1005_s24 = sadd.s32 1, %s917_s15   ;;  %s143_s22 = int_to_ptr.vmem [resolvable:$true] %s142_s22 }
  0x10   : > { %s1295_s20 = scalar_select %p991_p8, 1, 0 }
  0x11   : > { %p708_p10 = pneg %p991_p8  ;;  %s67_s25 = ssub.s32 %s917_s15, %s1005_s24 }
  0x12   : > { %s70_s26 = sadd.s32 1, %s913_s14  ;;  %p1010_p12 = scmp.eq.s32.totalorder %s67_s25, 0 }
  0x13   : > { %p1000_p11 = pnand %p708_p10, %p1289_p1  ;;  %s920_s28 = smov [#allocation2]  }
  0x14   : > { %s802_s4 = scalar_lea.vmem %s143_s22, 256  ;;  %p810_p7 = scmp.lt.s32.totalorder %s143_s22, %s143_s22 }
  0x15   : > { %711 = dma.hbm_to_smem (!%p1000_p11), %s1285_s0, 16, %s920_s28, [#allocation5]  }
  0x16   : > { %p793_p13 = pneg %p1000_p11  ;;  %p803_p0 = scmp.ne.s32.totalorder %s143_s22, %s802_s4 }
  0x17   : > { %p811_p10 = scmp.lt.s32.totalorder %s802_s4, %s802_s4 }
  0x18   : > { %p805_p3 = pnand %p803_p0, %p793_p13 }
  0x19   : > { %p812_p9 = por %p811_p10, %p810_p7 }
  0x1a   : > { %p806_p5 = pneg %p805_p3 }
  0x1c   : > { %p813_p1 = pnand %p812_p9, %p806_p5 }
  0x1e   : > { %816 = shalt.err (!%p813_p1)
}
  0x1f   : > { %714 = dma.hbm_to_vmem [thread:$0]  (!%p1000_p11), %s1286_s1, 256, %s143_s22, [#allocation3]  }
  0x20   : > { %s1029_s7 = scalar_select %p1010_p12, %s913_s14, %s70_s26  }
  0x21   : > { %p77_p9 = scmp.ne.s32.totalorder %s913_s14, %s909_s13  ;;  %p78_p1 = scmp.eq.s32.totalorder %s917_s15, 0 }
  0x22   : > { %p725_p13 = scmp.lt.s32.totalorder %s917_s15, 2  ;;  %s153_s8 = sand.u32 1, %s913_s14  }
  0x23   : > { %p79_p0 = por %p78_p1, %p77_p9  ;;  %p1038_p3 = por %p107_p2, %p77_p9 }
  0x24   : > { %s661_s10 = sshll.u32 %s153_s8, 3  ;;  %s694_s11 = sshll.u32 %s917_s15, 7 }
  0x25   : > { %s1298_s9 = scalar_select %p1038_p3, 1, 0 }
  0x26   : > { %s1046_s23 = scalar_lea.hbm %s1287_s2, %s694_s11  ;;  %s157_s22 = scalar_lea.vmem [#allocation7], %s661_s10 }
  0x27   : > { %s165_s25 = sshll.u32 %s157_s22, 4  ;;  %p1048_p11 = pnand %p725_p13, %p79_p0  ;;  %s166_s25 = int_to_ptr.vmem [resolvable:$true] %s165_s25 }
  0x28   : > { %s154_s27 = scalar_lea.sflag [#allocation8], %s153_s8  ;;  %s817_s28 = scalar_lea.hbm %s1046_s23, 128 }
  0x29   : > { %p818_p2 = scmp.ne.s32.totalorder %s1046_s23, %s817_s28  ;;  %p819_p12 = pneg %p1048_p11 }
  0x2a   : > { %s822_s4 = scalar_lea.hbm %s1287_s2, 256  ;;  %p823_p10 = scmp.lt.s32.totalorder %s1046_s23, %s1287_s2 }
  0x2b   : > { %p820_p5 = pnand %p819_p12, %p818_p2  ;;  %p824_p9 = scmp.lt.s32.totalorder %s822_s4, %s817_s28 }
  0x2d   : > { %p821_p7 = pneg %p820_p5  ;;  %p825_p1 = por %p824_p9, %p823_p10 }
  0x2f   : > { %p826_p13 = pnand %p825_p1, %p821_p7 }
  0x31   : > { %829 = shalt.err (!%p826_p13)
}
  0x32   : > { %s830_s10 = scalar_lea.vmem %s166_s25, 128  ;;  %s921_s8 = smov [#allocation7]  }
  0x33   : > { %p831_p0 = scmp.ne.s32.totalorder %s166_s25, %s830_s10  ;;  %s835_s11 = sshll.u32 %s921_s8, 4  ;;  %s836_s11 = int_to_ptr.vmem [resolvable:$false] %s835_s11 }
  0x34   : > { %s837_s17 = scalar_lea.vmem %s836_s11, 256  ;;  %p838_p2 = scmp.lt.s32.totalorder %s166_s25, %s836_s11 }
  0x35   : > { %p833_p6 = pnand %p831_p0, %p819_p12  ;;  %p839_p5 = scmp.lt.s32.totalorder %s837_s17, %s830_s10 }
  0x37   : > { %p834_p3 = pneg %p833_p6  ;;  %p840_p4 = por %p839_p5, %p838_p2 }
  0x39   : > { %p841_p8 = pnand %p840_p4, %p834_p3 }
  0x3b   : > { %844 = shalt.err (!%p841_p8)
}
  0x3c   : > { %718 = dma.hbm_to_vmem [thread:$0]  (!%p1048_p11), %s1046_s23, 128, %s166_s25, %s154_s27  }
  0x3d   : > { %p1300_p7 = scmp.ne.s32.totalorder %s1295_s20, 0 }
  0x3e   : > { %p1301_p10 = scmp.eq.s32.totalorder (!%p1300_p7), %s972_s16, 0 }
  0x3f   : > { %174 = sbr.rel (%p1300_p7) target bundleno = 305 (0x131), region = 32 }
  0x44   : > { %888 = dma.done.wait (%p1301_p10), [#allocation5], 16   ;;  %p1302_p6 = pmov %p1301_p10 }
  0x46   : > { %890 = vsyncadd (%p1302_p6), [#allocation5], 4294967280  ;;  %p1303_p12 = pmov %p1302_p6 }
  0x47   : > { %p1304_p9 = pmov %p1302_p6 }
  0x48   : > { %892 = dma.done.wait (%p1303_p12), [#allocation3], 256  }
  0x49   : > { %894 = vsyncadd (%p1304_p9), [#allocation3], 4294967040  ;;  %s1077_s21 = sand.u32 1, %s909_s13   ;;  %p1305_p4 = scmp.ne.s32.totalorder %s1293_s18, 0 }
  0x4a   : > { %s667_s20 = sshll.u32 %s1077_s21, 3  ;;  %s185_s23 = scalar_lea.sflag [#allocation8], %s1077_s21 }
  0x4b   : > { %s188_s22 = scalar_lea.vmem [#allocation7], %s667_s20 }
  0x4c   : > { %896 = dma.done.wait (%p1305_p4), %s185_s23, 128  }
  0x4d   : > { %898 = vsyncadd (%p1305_p4), %s185_s23, 4294967168 }
  0x4e   : > { %193 = sfence }
  0x4f   : > { %v1087_v0 = vld [vmem:[%s188_s22] sm:$0xff]  ;;  %vm216_vm0 = vcmask 1043456   ;;  %s1089_s25 = sld [smem:[#allocation2 + $0x2]]  ;;  %s922_s8 = smov 15  }
  0x50   : > { %v217_v1 = vsel %vm216_vm0, %v1087_v0, 0.0  ;;  %v233_v2 = vsel %vm216_vm0, %v1087_v0, -inf  ;;  %s1093_s26 = sld [smem:[#allocation2 + $0xb]]  ;;  %v214_v3 = vcombine.high %v1087_v0, %v1087_v0  ;;  %s923_s11 = smov 16  }
  0x51   : > { %v218_v4 = vrot.slane %v217_v1, 4  ;;  %v234_v5 = vrot.slane %v233_v2, 4  ;;  %s1097_s27 = sld [smem:[#allocation2 + $0x1]]  ;;  %p1306_p3 = scmp.ne.s32.totalorder %s1298_s9, 0 }
  0x52   : > { %v224_v6 = vsel %vm216_vm0, %v214_v3, 0.0  ;;  %v240_v7 = vsel %vm216_vm0, %v214_v3, -inf  ;;  %s1099_s18 = sld [smem:[#allocation2 + $0xa]] }
  0x53   : > { %v219_v8 = vadd.f32 %v218_v4, %v217_v1  ;;  %v235_v9 = vmax.f32 %v233_v2, %v234_v5  ;;  %v225_v10 = vrot.slane %v224_v6, 4  ;;  %v241_v11 = vrot.slane %v240_v7, 4  ;;  %s1101_s28 = sld [smem:[#allocation2]] }
  0x54   : > { %s1103_s29 = sld [smem:[#allocation2 + $0x9]] }
  0x55   : > { %v220_v12 = vrot.slane %v219_v8, 2  ;;  %v236_v13 = vrot.slane %v235_v9, 2  ;;  %v226_v14 = vadd.f32 %v225_v10, %v224_v6  ;;  %s1105_s30 = sld [smem:[#allocation2 + $0x3]]  ;;  %v242_v15 = vmax.f32 %v240_v7, %v241_v11 }
  0x56   : > { %s1107_s4 = sld [smem:[#allocation2 + $0xc]]  ;;  %v325_v23 = vstv %s1093_s26  ;;  %v322_v30 = vstv %s1089_s25  ;;  %s924_s26 = smov 17  }
  0x57   : > { %v221_v16 = vadd.f32 %v220_v12, %v219_v8  ;;  %v237_v17 = vmax.f32 %v235_v9, %v236_v13  ;;  %v227_v18 = vrot.slane %v226_v14, 2  ;;  %v243_v19 = vrot.slane %v242_v15, 2  ;;  %s1117_s5 = sld [smem:[#allocation2 + $0x5]] }
  0x58   : > { %v294_v25 = vstv %s1099_s18  ;;  %v291_v32 = vstv %s1097_s27  ;;  %s1123_s6 = sld [smem:[#allocation2 + $0xe]] }
  0x59   : > { %v222_v20 = vrot.slane %v221_v16, 1  ;;  %v238_v21 = vrot.slane %v237_v17, 1  ;;  %v228_v22 = vadd.f32 %v227_v18, %v226_v14  ;;  %v244_v24 = vmax.f32 %v242_v15, %v243_v19  ;;  %s1140_s10 = sld [smem:[#allocation2 + $0x6]] }
  0x5a   : > { %v273_v29 = vstv %s1103_s29  ;;  %v270_v33 = vstv %s1101_s28  ;;  %s1144_s17 = sld [smem:[#allocation2 + $0xf]]  ;;  %s925_s28 = smov 1  }
  0x5b   : > { %v223_v26 = vadd.f32 %v222_v20, %v221_v16  ;;  %v1111_v27 = vmax.f32 %v237_v17, %v238_v21  ;;  %v229_v28 = vrot.slane %v228_v22, 1  ;;  %v245_v31 = vrot.slane %v244_v24, 1  ;;  %s1146_s23 = sld [smem:[#allocation2 + $0x4]] }
  0x5c   : > { %v353_v40 = vstv %s1105_s30  ;;  %v356_v41 = vstv %s1107_s4  ;;  %s1150_s22 = sld [smem:[#allocation2 + $0xd]]  ;;  %s926_s30 = smov 127  }
  0x5d   : > { %v1119_v34 = vmul.f32 0.25, %v223_v26  ;;  %v326_v35 = vmul.f32 %v325_v23, %v1111_v27  ;;  %v230_v36 = vadd.f32 %v229_v28, %v228_v22  ;;  %v295_v37 = vmul.f32 %v294_v25, %v1111_v27  ;;  %s1154_s25 = sld [smem:[#allocation2 + $0x7]]  ;;  %s927_s4 = smov 113  }
  0x5e   : > { %v1125_v38 = vmax.f32 %v244_v24, %v245_v31  ;;  %v274_v39 = vmul.f32 %v273_v29, %v1111_v27  ;;  %v357_v51 = vmul.f32 %v356_v41, %v1111_v27  ;;  %v394_v56 = vstv %s1117_s5  ;;  %s1158_s27 = sld [smem:[#allocation2 + $0x10]]  ;;  %s928_s5 = smov 112  }
  0x5f   : > { %v323_v42 = vmul.f32 %v322_v30, %v1119_v34  ;;  %v1131_v43 = vmul.f32 0.25, %v230_v36  ;;  %v292_v44 = vmul.f32 %v291_v32, %v1119_v34  ;;  %v271_v45 = vmul.f32 %v270_v33, %v1119_v34  ;;  %s1165_s18 = sld [smem:[#allocation2 + $0x8]] }
  0x60   : > { %v327_v46 = vmul.f32 %v325_v23, %v1125_v38  ;;  %v354_v50 = vmul.f32 %v353_v40, %v1119_v34  ;;  %v275_v52 = vmul.f32 %v273_v29, %v1125_v38  ;;  %v397_v57 = vstv %s1123_s6  ;;  %s1168_s29 = sld [smem:[#allocation2 + $0x11]]  ;;  %s929_s6 = smov 111  }
  0x61   : > { %v328_v47 = vadd.f32 %v326_v35, %v323_v42  ;;  %v324_v48 = vmul.f32 %v322_v30, %v1131_v43  ;;  %v297_v49 = vadd.f32 %v295_v37, %v292_v44  ;;  %v276_v53 = vadd.f32 %v274_v39, %v271_v45 }
  0x62   : > { %v272_v55 = vmul.f32 %v270_v33, %v1131_v43  ;;  %v293_v58 = vmul.f32 %v291_v32, %v1131_v43  ;;  %v296_v59 = vmul.f32 %v294_v25, %v1125_v38  ;;  %v359_v60 = vadd.f32 %v357_v51, %v354_v50 }
  0x63   : > { %330 = vrot.lane.b32.xlu1 %v328_v47, %s922_s8  ;;  %299 = vrot.lane.b32.xlu0 %v297_v49, %s923_s11  ;;  %v329_v54 = vadd.f32 %v327_v46, %v324_v48  ;;  %v355_v62 = vmul.f32 %v353_v40, %v1131_v43  ;;  %v358_v63 = vmul.f32 %v356_v41, %v1125_v38  ;;  %v425_v5 = vstv %s1140_s10  ;;  %s686_s10 = sld [smem:[#allocation2 + $0x12]] }
  0x64   : > { %v277_v61 = vadd.f32 %v275_v52, %v272_v55  ;;  %v395_v1 = vmul.f32 %v394_v56, %v1119_v34  ;;  %v398_v2 = vmul.f32 %v397_v57, %v1111_v27  ;;  %v396_v3 = vmul.f32 %v394_v56, %v1131_v43 }
  0x65   : > { %v399_v4 = vmul.f32 %v397_v57, %v1125_v38  ;;  %v298_v6 = vadd.f32 %v296_v59, %v293_v58  ;;  %v360_v7 = vadd.f32 %v358_v63, %v355_v62  ;;  %v428_v8 = vstv %s1144_s17 }
  0x66   : > { %v400_v9 = vadd.f32 %v398_v2, %v395_v1  ;;  %v384_v10 = vstv %s1146_s23  ;;  %v387_v11 = vstv %s1150_s22  ;;  %v426_v12 = vmul.f32 %v425_v5, %v1119_v34 }
  0x67   : > { %278 = vrot.lane.b32.xlu0 %v276_v53, %s924_s26  ;;  %332 = vrot.lane.b32.xlu1 %v329_v54, %s922_s8  ;;  %v385_v13 = vmul.f32 %v384_v10, %v1119_v34  ;;  %v386_v14 = vmul.f32 %v384_v10, %v1131_v43  ;;  %v388_v15 = vmul.f32 %v387_v11, %v1111_v27  ;;  %v456_v21 = vstv %s1154_s25  ;;  %v1203_v53 = vld [vmem:[#allocation6] sm:$0xff]  ;;  %v1205_v54 = vld [vmem:[#allocation6 + $0x8] sm:$0xff]  ;;  %s695_s8 = sshll.u32 %s972_s16, 7 }
  0x68   : > { %v401_v16 = vadd.f32 %v399_v4, %v396_v3  ;;  %v429_v17 = vmul.f32 %v428_v8, %v1111_v27  ;;  %v427_v18 = vmul.f32 %v425_v5, %v1131_v43  ;;  %v389_v19 = vmul.f32 %v387_v11, %v1125_v38  ;;  %s560_s25 = scalar_lea.hbm %s1288_s3, %s695_s8 }
  0x69   : > { %v430_v20 = vmul.f32 %v428_v8, %v1125_v38  ;;  %v459_v22 = vstv %s1158_s27  ;;  %v1183_v23 = vadd.f32 %v388_v15, %v385_v13  ;;  %v457_v26 = vmul.f32 %v456_v21, %v1119_v34 }
  0x6a   : > { %v1185_v24 = vadd.f32 %v389_v19, %v386_v14  ;;  %v431_v25 = vadd.f32 %v429_v17, %v426_v12  ;;  %v460_v28 = vmul.f32 %v459_v22, %v1111_v27  ;;  %v458_v29 = vmul.f32 %v456_v21, %v1131_v43 }
  0x6b   : > { %361 = vrot.lane.b32.xlu0 %v359_v60, %s925_s28  ;;  %280 = vrot.lane.b32.xlu1 %v277_v61, %s924_s26  ;;  %v432_v30 = vadd.f32 %v430_v20, %v427_v18  ;;  %v461_v31 = vmul.f32 %v459_v22, %v1125_v38  ;;  %v487_v32 = vstv %s1165_s18  ;;  %v490_v33 = vstv %s1168_s29  ;;  %s548_s26 = scalar_lea.sflag [#allocation4], %s1077_s21  ;;  %s930_s18 = smov [#allocation9]  }
  0x6c   : > { %v462_v35 = vadd.f32 %v460_v28, %v457_v26  ;;  %v488_v36 = vmul.f32 %v487_v32, %v1119_v34  ;;  %v491_v37 = vmul.f32 %v490_v33, %v1111_v27  ;;  %v489_v40 = vmul.f32 %v487_v32, %v1131_v43  ;;  %s849_s16 = sshll.u32 %s930_s18, 4  ;;  %s850_s16 = int_to_ptr.vmem [resolvable:$false] %s849_s16 }
  0x6d   : > { %v463_v39 = vadd.f32 %v461_v31, %v458_v29  ;;  %v492_v41 = vmul.f32 %v490_v33, %v1125_v38  ;;  %v282_v45 = vlaneseq }
  0x6e   : > { %v493_v42 = vadd.f32 %v491_v37, %v488_v36 }
  0x6f   : > { %301 = vrot.lane.b32.xlu0 %v298_v6, %s923_s11  ;;  %363 = vrot.lane.b32.xlu1 %v360_v7, %s925_s28  ;;  %v494_v44 = vadd.f32 %v492_v41, %v489_v40  ;;  %v1198_v27 = vand.u32 127, %v282_v45  ;;  %s211_s11 = scalar_lea.vmem [#allocation9], %s667_s20  ;;  %s851_s20 = scalar_lea.vmem %s850_s16, 256 }
  0x70   : > { %s562_s17 = sshll.u32 %s211_s11, 4  ;;  %s563_s17 = int_to_ptr.vmem [resolvable:$true] %s562_s17 }
  0x71   : > { %vm334_vm1 = vcmp.lt.s32.totalorder %v1198_v27, 15  ;;  %vm303_vm2 = vcmp.lt.s32.totalorder %v1198_v27, 16  ;;  %vm365_vm3 = vcmp.lt.s32.totalorder %v1198_v27, 1  ;;  %vm284_vm4 = vcmp.lt.s32.totalorder %v1198_v27, 17  ;;  %s845_s27 = scalar_lea.vmem %s563_s17, 128  ;;  %p852_p13 = scmp.lt.s32.totalorder %s563_s17, %s850_s16 }
  0x72   : > { %vm406_vm5 = vcmp.lt.s32.totalorder %v1198_v27, 127  ;;  %vm437_vm6 = vcmp.lt.s32.totalorder %v1198_v27, 113  ;;  %vm468_vm7 = vcmp.lt.s32.totalorder %v1198_v27, 112  ;;  %vm499_vm8 = vcmp.lt.s32.totalorder %v1198_v27, 111  ;;  %p846_p8 = scmp.ne.s32.totalorder %s563_s17, %s845_s27  ;;  %p853_p0 = scmp.lt.s32.totalorder %s851_s20, %s845_s27 }
  0x73   : > { %402 = vrot.lane.b32.xlu0 %v400_v9, %s926_s30  ;;  %404 = vrot.lane.b32.xlu1 %v401_v16, %s926_s30 }
  0x74   : > { %p847_p11 = pnand %p846_p8, %p1306_p3  ;;  %p854_p2 = por %p853_p0, %p852_p13 }
  0x76   : > { %p848_p1 = pneg %p847_p11 }
  0x77   : > { %433 = vrot.lane.b32.xlu0 %v431_v25, %s927_s4  ;;  %435 = vrot.lane.b32.xlu1 %v432_v30, %s927_s4 }
  0x78   : > { %p855_p5 = pnand %p854_p2, %p848_p1 }
  0x7b   : > { %464 = vrot.lane.b32.xlu0 %v462_v35, %s928_s5  ;;  %466 = vrot.lane.b32.xlu1 %v463_v39, %s928_s5 }
  0x7f   : > { %495 = vrot.lane.b32.xlu0 %v493_v42, %s929_s6  ;;  %497 = vrot.lane.b32.xlu1 %v494_v44, %s929_s6 }
  0xd5   : > { %v331_v34 = vpop.permute.xlu1 %330  ;;  %v300_v46 = vpop.permute.xlu0 %299 }
  0xd9   : > { %v279_v47 = vpop.permute.xlu0 %278  ;;  %v333_v48 = vpop.permute.xlu1 %332 }
  0xda   : > { %v335_v43 = vsel %vm334_vm1, %v331_v34, %v333_v48  ;;  %v336_v38 = vsel %vm334_vm1, %v333_v48, %v331_v34 }
  0xdb   : > { %v339_v51 = vrot.slane %v336_v38, 6  ;;  %v340_v52 = vrot.slane %v335_v43, 6 }
  0xdd   : > { %v362_v49 = vpop.permute.xlu0 %361  ;;  %v281_v50 = vpop.permute.xlu1 %280  ;;  %v343_v2 = vmul.f32 %v339_v51, %v1203_v53  ;;  %v344_v3 = vmul.f32 %v340_v52, %v1205_v54 }
  0xde   : > { %v285_v4 = vsel %vm284_vm4, %v279_v47, %v281_v50  ;;  %v286_v5 = vsel %vm284_vm4, %v281_v50, %v279_v47 }
  0xdf   : > { %v287_v14 = vmul.f32 %v286_v5, %v1203_v53  ;;  %v288_v15 = vmul.f32 %v285_v4, %v1205_v54  ;;  %v347_v18 = vrot.slane %v343_v2, 2  ;;  %v348_v19 = vrot.slane %v344_v3, 2 }
  0xe1   : > { %v302_v55 = vpop.permute.xlu0 %301  ;;  %v364_v56 = vpop.permute.xlu1 %363 }
  0xe2   : > { %v304_v57 = vsel %vm303_vm2, %v300_v46, %v302_v55  ;;  %v305_v58 = vsel %vm303_vm2, %v302_v55, %v300_v46  ;;  %v366_v59 = vsel %vm365_vm3, %v362_v49, %v364_v56  ;;  %v367_v60 = vsel %vm365_vm3, %v364_v56, %v362_v49 }
  0xe3   : > { %v308_v61 = vrot.slane %v305_v58, 7  ;;  %v309_v62 = vrot.slane %v304_v57, 7  ;;  %v370_v63 = vrot.slane %v367_v60, 5  ;;  %v371_v1 = vrot.slane %v366_v59, 5 }
  0xe5   : > { %v312_v6 = vmul.f32 %v308_v61, %v1203_v53  ;;  %v313_v7 = vmul.f32 %v309_v62, %v1205_v54  ;;  %v374_v8 = vmul.f32 %v370_v63, %v1203_v53  ;;  %v375_v9 = vmul.f32 %v371_v1, %v1205_v54  ;;  %v403_v10 = vpop.permute.xlu0 %402  ;;  %v405_v11 = vpop.permute.xlu1 %404 }
  0xe6   : > { %v407_v12 = vsel %vm406_vm5, %v403_v10, %v405_v11  ;;  %v408_v13 = vsel %vm406_vm5, %v405_v11, %v403_v10 }
  0xe7   : > { %v316_v16 = vrot.slane %v312_v6, 1  ;;  %v317_v17 = vrot.slane %v313_v7, 1  ;;  %v411_v20 = vrot.slane %v407_v12, 4  ;;  %v412_v21 = vrot.slane %v408_v13, 4 }
  0xe8   : > { %v378_v26 = vrot.slane %v374_v8, 3  ;;  %v379_v28 = vrot.slane %v375_v9, 3  ;;  %v518_v13 = vstv %s686_s10 }
  0xe9   : > { %v320_v22 = vadd.f32 %v316_v16, %v287_v14  ;;  %v321_v25 = vadd.f32 %v317_v17, %v288_v15  ;;  %v434_v29 = vpop.permute.xlu0 %433  ;;  %v436_v30 = vpop.permute.xlu1 %435  ;;  %v415_v31 = vmul.f32 %v411_v20, %v1203_v53  ;;  %v416_v32 = vmul.f32 %v412_v21, %v1205_v54 }
  0xea   : > { %v438_v33 = vsel %vm437_vm6, %v434_v29, %v436_v30  ;;  %v439_v35 = vsel %vm437_vm6, %v436_v30, %v434_v29 }
  0xeb   : > { %v351_v36 = vadd.f32 %v347_v18, %v320_v22  ;;  %v352_v37 = vadd.f32 %v348_v19, %v321_v25  ;;  %v442_v39 = vrot.slane %v438_v33, 3  ;;  %v443_v40 = vrot.slane %v439_v35, 3 }
  0xec   : > { %v419_v50 = vrot.slane %v415_v31, 4  ;;  %v420_v51 = vrot.slane %v416_v32, 4 }
  0xed   : > { %v382_v41 = vadd.f32 %v378_v26, %v351_v36  ;;  %v383_v42 = vadd.f32 %v379_v28, %v352_v37  ;;  %v446_v44 = vmul.f32 %v442_v39, %v1203_v53  ;;  %v447_v34 = vmul.f32 %v443_v40, %v1205_v54  ;;  %v465_v46 = vpop.permute.xlu0 %464  ;;  %v467_v47 = vpop.permute.xlu1 %466 }
  0xee   : > { %v469_v48 = vsel %vm468_vm7, %v465_v46, %v467_v47  ;;  %v470_v43 = vsel %vm468_vm7, %v467_v47, %v465_v46 }
  0xef   : > { %v392_v38 = vadd.f32 %v1183_v23, %v382_v41  ;;  %v393_v49 = vadd.f32 %v1185_v24, %v383_v42  ;;  %v473_v52 = vrot.slane %v469_v48, 2  ;;  %v474_v55 = vrot.slane %v470_v43, 2 }
  0xf0   : > { %v450_v58 = vrot.slane %v446_v44, 5  ;;  %v451_v59 = vrot.slane %v447_v34, 5 }
  0xf1   : > { %v423_v56 = vadd.f32 %v419_v50, %v392_v38  ;;  %v424_v57 = vadd.f32 %v420_v51, %v393_v49  ;;  %v496_v60 = vpop.permute.xlu0 %495  ;;  %v498_v61 = vpop.permute.xlu1 %497  ;;  %v477_v62 = vmul.f32 %v473_v52, %v1203_v53  ;;  %v478_v63 = vmul.f32 %v474_v55, %v1205_v54 }
  0xf2   : > { %v500_v23 = vsel %vm499_vm8, %v496_v60, %v498_v61  ;;  %v501_v24 = vsel %vm499_vm8, %v498_v61, %v496_v60 }
  0xf3   : > { %v454_v1 = vadd.f32 %v450_v58, %v423_v56  ;;  %v455_v2 = vadd.f32 %v451_v59, %v424_v57  ;;  %v504_v3 = vrot.slane %v500_v23, 1  ;;  %v505_v4 = vrot.slane %v501_v24, 1 }
  0xf4   : > { %v481_v5 = vrot.slane %v477_v62, 6  ;;  %v482_v6 = vrot.slane %v478_v63, 6 }
  0xf5   : > { %v508_v7 = vmul.f32 %v504_v3, %v1203_v53  ;;  %v509_v8 = vmul.f32 %v505_v4, %v1205_v54  ;;  %v534_v54 = vshrl.u32 %v282_v45, 7 }
  0xf6   : > { %v485_v9 = vadd.f32 %v481_v5, %v454_v1  ;;  %v486_v10 = vadd.f32 %v482_v6, %v455_v2 }
  0xf7   : > { %v512_v11 = vrot.slane %v508_v7, 7  ;;  %v513_v12 = vrot.slane %v509_v8, 7  ;;  %v535_v22 = vsub.s32 0, %v534_v54 }
  0xf9   : > { %v516_v14 = vadd.f32 %v512_v11, %v485_v9  ;;  %v517_v15 = vadd.f32 %v513_v12, %v486_v10 }
  0xfb   : > { %v519_v16 = vadd.f32 %v518_v13, %v516_v14  ;;  %v520_v27 = vadd.f32 %v518_v13, %v517_v15 }
  0xfd   : > { %v687_v17 = vmul.f32 -1.442695, %v519_v16  ;;  %v688_v18 = vmul.f32 -1.442695, %v520_v27 }
  0xff   : > { %772 = vpow2.f32 %v687_v17 }
 0x100   : > { %774 = vpow2.f32 %v688_v18 }
 0x10c   : > { %v773_v19 = vpop.eup %772 }
 0x10d   : > { %v775_v20 = vpop.eup %774  ;;  %v527_v53 = vadd.f32 1.0, %v773_v19 }
 0x10e   : > { %v528_v21 = vadd.f32 1.0, %v775_v20 }
 0x10f   : > { %776 = vrcp.f32 %v527_v53 }
 0x110   : > { %778 = vrcp.f32 %v528_v21 }
 0x11c   : > { %v777_v25 = vpop.eup %776 }
 0x11d   : > { %v779_v26 = vpop.eup %778  ;;  %v536_v28 = vrot.slane %v777_v25, %v535_v22 }
 0x11e   : > { %v540_v29 = vrot.slane %v779_v26, %v535_v22 }
 0x120   : > { %v543_v30 = vcombine.low %v536_v28, %v540_v29 }
 0x122   : > { %v545_v31 = vmul.f32 %v543_v30, %v1087_v0 }
 0x124   : > { %546 = vst [vmem:[%s211_s11] sm:$0xff] %v545_v31 }
 0x125   : > { %858 = shalt.err (!%p855_p5)
}
 0x126   : > { %s859_s28 = scalar_lea.hbm %s560_s25, 128  ;;  %s863_s30 = scalar_lea.hbm %s1288_s3, 256 }
 0x127   : > { %p860_p7 = scmp.ne.s32.totalorder %s560_s25, %s859_s28  ;;  %p864_p12 = scmp.lt.s32.totalorder %s560_s25, %s1288_s3 }
 0x128   : > { %p865_p9 = scmp.lt.s32.totalorder %s863_s30, %s859_s28 }
 0x129   : > { %p861_p10 = pnand %p860_p7, %p1306_p3 }
 0x12a   : > { %p866_p4 = por %p865_p9, %p864_p12 }
 0x12b   : > { %p862_p6 = pneg %p861_p10 }
 0x12d   : > { %p867_p8 = pnand %p866_p4, %p862_p6 }
 0x12f   : > { %870 = shalt.err (!%p867_p8)
}
 0x130   : > { %706 = dma.vmem_to_hbm [thread:$0]  (%p1306_p3), %s563_s17, 128, %s560_s25, %s548_s26  }
 0x131 PF: > { %s574_s6 = sand.u32 1, %s905_s12   ;;  %p1307_p11 = scmp.ne.s32.totalorder %s1294_s19, 0 }
 0x132   : > { %p1308_p1 = scmp.ge.s32.totalorder %s917_s15, 2  ;;  %s575_s10 = scalar_lea.sflag [#allocation4], %s574_s6 }
 0x134   : > { %p720_p13 = pnand %p1308_p1, %p1307_p11 }
 0x136   : > { %p721_p0 = pneg %p720_p13 }
 0x138   : > { %900 = dma.done.wait (%p721_p0), %s575_s10, 128  }
 0x139   : > { %902 = vsyncadd (%p721_p0), %s575_s10, 4294967168  ;;  %p18_p2 = scmp.ge.s32.totalorder %s1005_s24, 4   ;;  %s1309_s12 = smov %s909_s13 }
 0x13a   : > { %s1310_s13 = smov %s913_s14  ;;  %s1311_s14 = smov %s1029_s7 }
 0x13b   : > { %s1312_s15 = smov %s1005_s24  ;;  %20 = sbr.rel (!%p18_p2) target bundleno = 7 (0x7), region = 87 }
 0x140   :  { %580 = vsyncpa [#allocation3], 1 }
 0x141   :  { %582 = vsyncpa [#allocation3 + $0x1], 1 }
 0x142   :  { %583 = vsyncpa [#allocation8], 1 }
 0x143   :  { %585 = vsyncpa [#allocation8 + $0x1], 1 }
 0x144   :  { %586 = vsyncpa [#allocation4], 1 }
 0x145   :  { %588 = vsyncpa [#allocation4 + $0x1], 1 }
 0x146   :  { %589 = vsyncpa [#allocation5], 1 }
 0x147   :  { %591 = vsyncpa [#allocation5 + $0x1], 1 }

</bundles_post_ra>
